<compile_context>
chip_gen: v5e
topology: v5e:2x2
jax: 0.10.0
libtpu: 0.0.40
codegen_flags: <defaults>
</compile_context>

<pallas_src>
import functools

import jax
import jax.numpy as jnp
from jax import lax
from jax.experimental import pallas as pl
from jax.experimental.pallas import tpu as pltpu


def _round_up(x, m):
    return ((x + m - 1) // m) * m


def _linear_kernel(x_ref, w_ref, b_ref, o_ref, *, compute_dtype):
    # x_ref: (tm, F)   row tile of the nodes (cast in-kernel if requested)
    # w_ref: (F, Dp)   pre-transposed weight, resident across the grid
    # b_ref: (1, Dp)   f32 bias, resident
    # o_ref: (tm, Dp)  output tile (lane-dense when Dp % 128 == 0)
    x = x_ref[...].astype(compute_dtype)
    w = w_ref[...].astype(compute_dtype)
    acc = lax.dot_general(
        x, w,
        dimension_numbers=(((1,), (0,)), ((), ())),   # (M,K) x (K,N)
        preferred_element_type=jnp.float32,
    )
    o_ref[...] = (acc + b_ref[...]).astype(o_ref.dtype)


def node_embedding(x, weight, bias, *, tm=512, compute_dtype=None,
                   out_dtype=None):
    """y = x @ weight.T + bias  (semantics of torch.nn.Linear).

    compute_dtype: MXU operand dtype. Defaults to x.dtype (f32 path == exact
        nn.Linear semantics). Pass jnp.bfloat16 to opt into the faster,
        lower-precision path; the cast happens in-kernel and the accumulation
        plus bias add stay f32.
    out_dtype: output dtype. Defaults to x.dtype; pass jnp.bfloat16 to halve
        the output HBM writeback when downstream tolerates it.
    """
    n, f = x.shape
    d, f_w = weight.shape
    assert f == f_w, (f, f_w)
    out_dtype = x.dtype if out_dtype is None else out_dtype
    compute_dtype = x.dtype if compute_dtype is None else compute_dtype

    if n == 0:  # degenerate: empty node set
        return jnp.zeros((0, d), out_dtype)

    # Pre-transpose the weight once: (F, D) layout, D on the lane axis.
    w_t = weight.T
    b_row = bias.astype(jnp.float32).reshape(1, d)

    # Lane-dense output only pays when d is small; for large ragged d the
    # pad + post-slice extra HBM pass costs more than a masked tail store.
    if d % 128 != 0 and d < 256:
        d_pad = _round_up(d, 128)
        w_t = jnp.pad(w_t, ((0, 0), (0, d_pad - d)))
        b_row = jnp.pad(b_row, ((0, 0), (0, d_pad - d)))
    else:
        d_pad = d

    # Row tile: multiple of 8, no larger than the (8-aligned) problem; keep
    # at least 2 grid steps when possible so both v7x TensorCores get work.
    tm_eff = min(tm, _round_up(n, 8))
    if n > 8 and pl.cdiv(n, tm_eff) < 2:
        tm_eff = _round_up(pl.cdiv(n, 2), 8)
    grid = (pl.cdiv(n, tm_eff),)

    def _isz(dt):
        return jnp.dtype(dt).itemsize

    cost = pl.CostEstimate(
        flops=2 * n * f * d_pad,
        transcendentals=0,
        bytes_accessed=(x.size * _isz(x.dtype)
                        + w_t.size * _isz(w_t.dtype)
                        + b_row.size * 4
                        + n * d_pad * _isz(out_dtype)),
    )

    kernel = functools.partial(_linear_kernel, compute_dtype=compute_dtype)
    out = pl.pallas_call(
        kernel,
        out_shape=jax.ShapeDtypeStruct((n, d_pad), out_dtype),
        grid_spec=pltpu.PrefetchScalarGridSpec(
            num_scalar_prefetch=0,
            grid=grid,
            in_specs=[
                # Streamed row tiles of x (partial last tile handled by Pallas).
                pl.BlockSpec((tm_eff, f), lambda i: (i, 0)),
                # Resident weight / bias: constant index_map -> single-buffer
                # them (halves their VMEM footprint; matters on v7x's 64 MiB).
                pl.BlockSpec((f, d_pad), lambda i: (0, 0),
                             pipeline_mode=pl.Buffered(1)),
                pl.BlockSpec((1, d_pad), lambda i: (0, 0),
                             pipeline_mode=pl.Buffered(1)),
            ],
            out_specs=pl.BlockSpec((tm_eff, d_pad), lambda i: (i, 0)),
        ),
        compiler_params=pltpu.CompilerParams(
            dimension_semantics=("parallel",),   # row axis shards across TCs
        ),
        cost_estimate=cost,
    )(x, w_t, b_row)

    # Only the (cheap, small-d) lane padding needs stripping; rows were never
    # padded.
    return out if d_pad == d else out[:, :d]


if __name__ == "__main__":
    # Small shapes consistent with the module: 16 nodes, node_in_features=8,
    # d_model=32.
    num_nodes = 16
    node_in_features = 8
    d_model = 32

    key = jax.random.PRNGKey(0)
    kx, kw, kb = jax.random.split(key, 3)

    x = jax.random.normal(kx, (num_nodes, node_in_features), dtype=jnp.float32)

    # nn.Linear default init: uniform in +-1/sqrt(in_features)
    bound = 1.0 / (node_in_features ** 0.5)
    weight = jax.random.uniform(
        kw, (d_model, node_in_features), minval=-bound, maxval=bound,
        dtype=jnp.float32)
    bias = jax.random.uniform(
        kb, (d_model,), minval=-bound, maxval=bound, dtype=jnp.float32)

    y_ref = x @ weight.T + bias

    # Default path: f32 operands, exact nn.Linear semantics (typically ~1e-6;
    # loose tolerance only to stay robust to MXU f32 pass strategy).
    y = jax.block_until_ready(node_embedding(x, weight, bias))
    assert y.shape == (num_nodes, d_model)
    assert jnp.allclose(y, y_ref, atol=1e-2, rtol=1e-2), (
        float(jnp.max(jnp.abs(y - y_ref))))

    # Opt-in low-precision path (bf16 operands, f32 accumulation).
    y_bf16 = jax.block_until_ready(
        node_embedding(x, weight, bias, compute_dtype=jnp.bfloat16))
    assert jnp.allclose(y_bf16, y_ref, atol=2e-2, rtol=2e-2), (
        float(jnp.max(jnp.abs(y_bf16 - y_ref))))

    print("KERNEL_OK")
</pallas_src>

<mosaic_0001>
module attributes {stable_mosaic.version = 11 : i64} {
  func.func @_linear_kernel(%arg0: i32, %arg1: memref<8x8xf32, #tpu.memory_space<vmem>>, %arg2: memref<8x128xf32, #tpu.memory_space<vmem>>, %arg3: memref<1x128xf32, #tpu.memory_space<vmem>>, %arg4: memref<8x128xf32, #tpu.memory_space<vmem>>) attributes {dimension_semantics = [#tpu.dimension_semantics<parallel>], iteration_bounds = array<i64: 2>, scalar_prefetch = 0 : i64, scratch_operands = 0 : i64, tpu.core_type = #tpu.core_type<tc>, window_params = [{transform_indices = @transform_0, window_bounds = array<i64: 8, 8>}, {pipeline_mode = #tpu.pipeline_mode<synchronous>, transform_indices = @transform_1, window_bounds = array<i64: 8, 128>}, {pipeline_mode = #tpu.pipeline_mode<synchronous>, transform_indices = @transform_2, window_bounds = array<i64: 1, 128>}, {transform_indices = @transform_3, window_bounds = array<i64: 8, 128>}]} {
    %c0 = arith.constant 0 : index
    %c0_0 = arith.constant 0 : index
    %0 = vector.load %arg1[%c0, %c0_0] : memref<8x8xf32, #tpu.memory_space<vmem>>, vector<8x8xf32>
    %c0_1 = arith.constant 0 : index
    %c0_2 = arith.constant 0 : index
    %1 = vector.load %arg2[%c0_1, %c0_2] : memref<8x128xf32, #tpu.memory_space<vmem>>, vector<8x128xf32>
    %cst = arith.constant dense<0.000000e+00> : vector<8x128xf32>
    %2 = tpu.matmul %0, %1, %cst {dimension_numbers = #tpu.dot_dimension_numbers<[1], [0], [0], [1], [0, 0, 1, 1], [], []>} : vector<8x8xf32>, vector<8x128xf32>, vector<8x128xf32> -> vector<8x128xf32>
    %c0_3 = arith.constant 0 : index
    %c0_4 = arith.constant 0 : index
    %3 = vector.load %arg3[%c0_3, %c0_4] : memref<1x128xf32, #tpu.memory_space<vmem>>, vector<1x128xf32>
    %4 = vector.broadcast %3 : vector<1x128xf32> to vector<8x128xf32>
    %5 = arith.addf %2, %4 : vector<8x128xf32>
    %c0_5 = arith.constant 0 : index
    %c0_6 = arith.constant 0 : index
    %6 = vector.load %arg4[%c0_5, %c0_6] : memref<8x128xf32, #tpu.memory_space<vmem>>, vector<8x128xf32>
    tpu.vector_store %arg4[%c0_5, %c0_6], %5 {strides = array<i32>} : memref<8x128xf32, #tpu.memory_space<vmem>>, vector<8x128xf32>,
    return
  }
  func.func @transform_0(%arg0: i32) -> (i32, i32) {
    %c0_i32 = arith.constant 0 : i32
    %c0_i32_0 = arith.constant 0 : i32
    return %arg0, %c0_i32 : i32, i32
  }
  func.func @transform_1(%arg0: i32) -> (i32, i32) {
    %c0_i32 = arith.constant 0 : i32
    %c0_i32_0 = arith.constant 0 : i32
    %c0_i32_1 = arith.constant 0 : i32
    return %c0_i32, %c0_i32_0 : i32, i32
  }
  func.func @transform_2(%arg0: i32) -> (i32, i32) {
    %c0_i32 = arith.constant 0 : i32
    %c0_i32_0 = arith.constant 0 : i32
    %c0_i32_1 = arith.constant 0 : i32
    return %c0_i32, %c0_i32_0 : i32, i32
  }
  func.func @transform_3(%arg0: i32) -> (i32, i32) {
    %c0_i32 = arith.constant 0 : i32
    %c0_i32_0 = arith.constant 0 : i32
    return %arg0, %c0_i32 : i32, i32
  }
}

</mosaic_0001>

<bundles_post_ra>
// kernel: tpu_custom_call.1
= control target key start
LH: loop header
LB: loop body
LE: loop exit
PB: predicated region body
PF: predicated region fallthrough
CT: control target
= control target key end

     0   :  { %8 = vsyncpa [#allocation3], 0  ;;  %s498_s0 = inlined_call_operand.vmem [shape: f32[16,8], index: 0, kind: input, shape index: {}]   ;;  %s499_s1 = inlined_call_operand.vmem [shape: f32[8,128], index: 1, kind: input, shape index: {}]   ;;  %s500_s2 = inlined_call_operand.vmem [shape: f32[1,128], index: 2, kind: input, shape index: {}]   ;;  %s501_s3 = inlined_call_operand.hbm [shape: f32[16,128], index: 3, kind: output, shape index: {}]  }
   0x1   :  { %10 = vsyncpa [#allocation3 + $0x1], 0  ;;  %s407_s12 = smov 0   ;;  %s409_s13 = smov 0  }
   0x2   :  { %s411_s14 = smov 0   ;;  %s413_s15 = smov 0  }
   0x3 LB: > { %s428_s16 = sadd.s32 4294967295, %s385_s15   ;;  %s272_s17 = sadd.s32 4294967294, %s385_s15   ;;  %s385_s15 = sphi %s413_s15, %s507_s15   ;;  %s381_s14 = sphi %s411_s14, %s506_s14   ;;  %s377_s13 = sphi %s409_s13, %s505_s13   ;;  %s373_s12 = sphi %s407_s12, %s504_s12  }
   0x4   : > { %s432_s18 = sadd.s32 1, %s385_s15   ;;  %s91_s19 = sadd.s32 1, %s381_s14 }
   0x5   : > { %s88_s20 = ssub.s32 %s385_s15, %s432_s18  ;;  %p101_p0 = scmp.ne.s32.totalorder %s381_s14, %s377_s13 }
   0x6   : > { %p89_p1 = scmp.eq.s32.totalorder %s88_s20, 0  ;;  %p102_p2 = scmp.eq.s32.totalorder %s428_s16, 1 }
   0x7   : > { %p107_p3 = scmp.ne.s32.totalorder %s377_s13, %s373_s12  ;;  %p108_p4 = scmp.eq.s32.totalorder %s272_s17, 1 }
   0x8   : > { %s443_s21 = scalar_select %p89_p1, %s381_s14, %s91_s19  }
   0x9   : > { %p445_p5 = por %p102_p2, %p101_p0  ;;  %p449_p6 = por %p108_p4, %p107_p3 }
   0xa   : > { %p275_p7 = scmp.ge.s32.totalorder %s385_s15, 1  ;;  %p139_p8 = scmp.lt.s32.totalorder %s385_s15, 3 }
   0xc   : > { %p140_p9 = pnand %p275_p7, %p139_p8 }
   0xd   : > { %p162_p10 = scmp.lt.s32.totalorder (!%p140_p9), %s428_s16, 1  ;;  %s159_s4 = sand.u32 (!%p140_p9), 1, %s377_s13  }
   0xe   : > { %143 = sbr.rel (%p140_p9) target bundleno = 155 (0x9b), region = 32  ;;  %s276_s5 = sshll.u32 (!%p140_p9), %s159_s4, 3 }
   0xf   : > { %s280_s6 = sshll.u32 (!%p140_p9), %s428_s16, 3  ;;  %s161_s17 = scalar_lea.vmem (!%p140_p9), [#allocation2], %s276_s5 }
  0x10   : > { %s208_s9 = scalar_lea.hbm (!%p140_p9), %s501_s3, %s280_s6  ;;  %s210_s19 = sshll.u32 (!%p140_p9), %s161_s17, 4  ;;  %s211_s19 = int_to_ptr.vmem [resolvable:$true] %s210_s19 }
  0x11   : > { %s212_s20 = sshll.u32 (!%p140_p9), %s208_s9, 4  ;;  %s198_s24 = scalar_lea.sflag (!%p140_p9), [#allocation3], %s159_s4  ;;  %s213_s20 = int_to_ptr.hbm [resolvable:$true] %s212_s20 }
  0x12   : > { %s337_s25 = sshra.s32 (!%p140_p9), %s213_s20, 4  ;;  %s343_s28 = scalar_lea.hbm (!%p140_p9), %s501_s3, 16  ;;  %s338_s25 = int_to_ptr.hbm [resolvable:$true] %s337_s25 }
  0x13   : > { %v167_v0 = vld [vmem:[%s499_s1] sm:$0xff]  ;;  %s163_s26 = scalar_select %p162_p10, %s428_s16, 1  ;;  %vm172_vm0 = vcmask 64512  }
  0x14   : > { %191 = vmatpush.msra.mxu0 %v167_v0  ;;  %v322_v2 = vld [vmem:[%s500_s2] ss:$0 sm:$0xff]  ;;  %s339_s16 = scalar_lea.hbm %s338_s25, 8  ;;  %p344_p0 = scmp.lt.s32.totalorder %s338_s25, %s501_s3 }
  0x15   : > { %s277_s27 = sshll.u32 %s163_s26, 3  ;;  %p340_p11 = scmp.ne.s32.totalorder %s338_s25, %s339_s16 }
  0x16   : > { %s165_s30 = scalar_lea.vmem %s498_s0, %s277_s27  ;;  %p345_p1 = scmp.lt.s32.totalorder %s343_s28, %s339_s16 }
  0x17   : > { %v166_v1 = vld [vmem:[%s165_s30] sm:$0xff]  ;;  %p341_p12 = pnand %p340_p11, %p445_p5 }
  0x18   : > { %278 = vmatmul.msk.f32.vlgmr.msra.gmra.mxu0 %vm172_vm0, %v166_v1  ;;  %p346_p2 = por %p345_p1, %p344_p0 }
  0x19   : > { %p342_p13 = pneg %p341_p12 }
  0x1b   : > { %p347_p3 = pnand %p346_p2, %p342_p13 }
  0x95   : > { %v193_v3 = vpop.f32.mrf.mxu0 }
  0x96   : > { %v194_v4 = vadd.f32 %v322_v2, %v193_v3 }
  0x98   : > { %196 = vst [vmem:[%s161_s17] sm:$0xff] %v194_v4 }
  0x99   : > { %350 = shalt.err (!%p347_p3)
}
  0x9a   : > { %283 = dma.vmem_to_hbm [thread:$0]  (%p445_p5), %s211_s19, 128, %s213_s20, %s198_s24  }
  0x9b PF: > { %p289_p4 = scmp.ge.s32.totalorder %s385_s15, 2  ;;  %s224_s4 = sand.u32 1, %s373_s12  }
  0x9c   : > { %s225_s5 = scalar_lea.sflag [#allocation3], %s224_s4 }
  0x9d   : > { %p286_p7 = pnand %p289_p4, %p449_p6 }
  0x9f   : > { %p287_p8 = pneg %p286_p7 }
  0xa1   : > { %368 = dma.done.wait (%p287_p8), %s225_s5, 128  }
  0xa2   : > { %370 = vsyncadd (%p287_p8), %s225_s5, 4294967168  ;;  %p13_p9 = scmp.ge.s32.totalorder %s432_s18, 4   ;;  %s504_s12 = smov %s377_s13 }
  0xa3   : > { %s505_s13 = smov %s381_s14  ;;  %s506_s14 = smov %s443_s21 }
  0xa4   : > { %s507_s15 = smov %s432_s18  ;;  %15 = sbr.rel (!%p13_p9) target bundleno = 3 (0x3), region = 67 }
  0xa9   :  { %231 = vsyncpa [#allocation3], 1 }
  0xaa   :  { %233 = vsyncpa [#allocation3 + $0x1], 1 }

</bundles_post_ra>
